<compile_context>
chip_gen: v5e
topology: v5e:2x2
jax: 0.10.0
libtpu: 0.0.40
codegen_flags: <defaults>
</compile_context>

<pallas_src>
import jax
import jax.numpy as jnp
from jax.experimental import pallas as pl
from jax.experimental.pallas import tpu as pltpu


def _chomp_copy_kernel(x_ref, o_ref):
    # x_ref: (rows_tile, L_in_blk) VMEM tile; o_ref: (rows_tile, L_out) tile.
    # When L_in_blk == L_out this is a straight copy; otherwise the slice
    # drops the (already minimized) chomped tail lanes inside VMEM.
    l_out = o_ref.shape[-1]
    o_ref[...] = x_ref[:, :l_out]


def _row_quantum(dtype) -> int:
    # Sublane packing: 8 rows for 4-byte dtypes, 16 for 2-byte, 32 for 1-byte.
    return max(8, 32 // jnp.dtype(dtype).itemsize)


def chomp1d(x: jax.Array, chomp_size: int) -> jax.Array:
    """Remove the last `chomp_size` elements along the last axis of (B, C, L)."""
    assert x.ndim == 3, "expected (B, C, L)"
    B, C, L = x.shape
    # PyTorch's x[:, :, :-0] would be empty; require a meaningful chomp.
    assert 0 < chomp_size < L, "require 0 < chomp_size < L"
    L_out = L - chomp_size

    total_rows = B * C
    # Contiguous row-major reshape: metadata-only, no data movement.
    x2 = x.reshape(total_rows, L)

    itemsize = jnp.dtype(x.dtype).itemsize
    rq = _row_quantum(x.dtype)

    # Input block last dim: smallest lane-aligned width covering the kept
    # prefix (avoids reading the chomped tail from HBM), or the full L if the
    # rounded width would reach/exceed it (full-extent blocks are always legal).
    l_in_blk = ((L_out + 127) // 128) * 128
    if l_in_blk >= L:
        l_in_blk = L

    # Largest row tile under a conservative VMEM budget safe on every
    # generation, accounting for double-buffered input + output blocks.
    budget_bytes = 12 * 1024 * 1024
    bytes_per_row = 2 * (l_in_blk + L_out) * itemsize
    max_rows = max(rq, budget_bytes // max(bytes_per_row, 1))
    rows_tile = min(1024, max_rows, total_rows)
    if rows_tile < total_rows:
        # Partial row tiles must be a multiple of the sublane packing.
        rows_tile = max((rows_tile // rq) * rq, rq)
    else:
        # Full row extent is always a legal block dim.
        rows_tile = total_rows

    grid = (pl.cdiv(total_rows, rows_tile),)

    out2 = pl.pallas_call(
        _chomp_copy_kernel,
        out_shape=jax.ShapeDtypeStruct((total_rows, L_out), x.dtype),
        grid_spec=pltpu.PrefetchScalarGridSpec(
            num_scalar_prefetch=0,
            grid=grid,
            in_specs=[pl.BlockSpec((rows_tile, l_in_blk), lambda r: (r, 0))],
            out_specs=pl.BlockSpec((rows_tile, L_out), lambda r: (r, 0)),
        ),
        compiler_params=pltpu.CompilerParams(
            dimension_semantics=("parallel",),
            vmem_limit_bytes=32 * 1024 * 1024,
        ),
    )(x2)

    return out2.reshape(B, C, L_out)


if __name__ == "__main__":
    # Deterministic small example consistent with the module: (B, C, L).
    key = jax.random.PRNGKey(0)
    B, C, L = 2, 4, 16
    chomp_size = 3
    x = jax.random.normal(key, (B, C, L), dtype=jnp.float32)

    out = chomp1d(x, chomp_size)
    out = jax.block_until_ready(out)

    # Reference check against the PyTorch semantics x[:, :, :-chomp_size].
    ref = x[:, :, :-chomp_size]
    assert out.shape == (B, C, L - chomp_size), out.shape
    assert out.dtype == x.dtype
    assert jnp.array_equal(out, ref), "Pallas chomp output mismatch"

    print("KERNEL_OK")
</pallas_src>

<mosaic_0001>
module attributes {stable_mosaic.version = 11 : i64} {
  func.func @_chomp_copy_kernel(%arg0: i32, %arg1: memref<8x16xf32, #tpu.memory_space<vmem>>, %arg2: memref<8x13xf32, #tpu.memory_space<vmem>>) attributes {dimension_semantics = [#tpu.dimension_semantics<parallel>], iteration_bounds = array<i64: 1>, scalar_prefetch = 0 : i64, scratch_operands = 0 : i64, tpu.core_type = #tpu.core_type<tc>, window_params = [{transform_indices = @transform_0, window_bounds = array<i64: 8, 16>}, {transform_indices = @transform_1, window_bounds = array<i64: 8, 13>}]} {
    %c0 = arith.constant 0 : index
    %c0_0 = arith.constant 0 : index
    %0 = vector.load %arg1[%c0, %c0_0] : memref<8x16xf32, #tpu.memory_space<vmem>>, vector<8x13xf32>
    %c0_1 = arith.constant 0 : index
    %c0_2 = arith.constant 0 : index
    %1 = vector.load %arg2[%c0_1, %c0_2] : memref<8x13xf32, #tpu.memory_space<vmem>>, vector<8x13xf32>
    tpu.vector_store %arg2[%c0_1, %c0_2], %0 {strides = array<i32>} : memref<8x13xf32, #tpu.memory_space<vmem>>, vector<8x13xf32>,
    return
  }
  func.func @transform_0(%arg0: i32) -> (i32, i32) {
    %c0_i32 = arith.constant 0 : i32
    %c0_i32_0 = arith.constant 0 : i32
    return %arg0, %c0_i32 : i32, i32
  }
  func.func @transform_1(%arg0: i32) -> (i32, i32) {
    %c0_i32 = arith.constant 0 : i32
    %c0_i32_0 = arith.constant 0 : i32
    return %arg0, %c0_i32 : i32, i32
  }
}

</mosaic_0001>

<bundles_post_ra>
// kernel: tpu_custom_call.1
= control target key start
LH: loop header
LB: loop body
LE: loop exit
PB: predicated region body
PF: predicated region fallthrough
CT: control target
= control target key end

     0   :  { %6 = vsyncpa [#allocation3], 0  ;;  %s115_s0 = inlined_call_operand.hbm [shape: f32[8,16], index: 0, kind: input, shape index: {}]   ;;  %s116_s1 = inlined_call_operand.hbm [shape: f32[8,13], index: 1, kind: output, shape index: {}]  }
   0x1   :  { %7 = vsyncpa [#allocation4], 0  ;;  %s13_s8 = sshll.u32 %s115_s0, 4  ;;  %s97_s9 = smov [#allocation2]   ;;  %s14_s8 = int_to_ptr.hbm [resolvable:$true] %s13_s8 }
   0x2   :  { %s15_s10 = sshll.u32 %s97_s9, 4  ;;  %s16_s10 = int_to_ptr.vmem [resolvable:$true] %s15_s10 }
   0x3   :  { %18 = dma.hbm_to_vmem [thread:$0]  %s14_s8, 128, %s16_s10, [#allocation3]  }
   0x4   :  { %93 = dma.done.wait [#allocation3], 128  }
   0x5   :  { %94 = vsyncadd [#allocation3], 4294967168  ;;  %s98_s11 = smov [#allocation5]   ;;  %s33_s15 = sshll.u32 %s116_s1, 4  ;;  %vm24_vm0 = vcmask 105472   ;;  %v23_v0 = vld [vmem:[#allocation2] sm:$0xff]  ;;  %s34_s15 = int_to_ptr.hbm [resolvable:$true] %s33_s15 }
   0x6   :  { %s31_s12 = sshll.u32 %s98_s11, 4  ;;  %25 = vst.msk [vmem:[#allocation5] sm:$0xff] %vm24_vm0, %v23_v0  ;;  %s32_s12 = int_to_ptr.vmem [resolvable:$true] %s31_s12 }
   0x7   :  { %36 = dma.vmem_to_hbm [thread:$0]  %s32_s12, 128, %s34_s15, [#allocation4]  }
   0x8   :  { %95 = dma.done.wait [#allocation4], 128  }
   0x9   :  { %96 = vsyncadd [#allocation4], 4294967168 }
   0xa   :  { %41 = vsyncpa [#allocation3], 1 }
   0xb   :  { %42 = vsyncpa [#allocation4], 1 }

</bundles_post_ra>
